<compile_context>
chip_gen: v5e
topology: v5e:2x2
jax: 0.10.0
libtpu: 0.0.40
codegen_flags: <defaults>
</compile_context>

<pallas_src>
import functools

import jax
import jax.numpy as jnp
from jax.experimental import pallas as pl
from jax.experimental.pallas import tpu as pltpu

LANES = 128
TARGET_BLOCK_BYTES = 2 * 1024 * 1024   # per input, per (double-)buffer


def _charbonnier_kernel(pred_ref, true_ref, out_ref, *, eps2, ragged_rows):
    """Accumulates per-lane partial sums of sqrt(diff^2 + eps^2) into out_ref."""
    i = pl.program_id(0)

    @pl.when(i == 0)
    def _():
        out_ref[...] = jnp.zeros_like(out_ref)

    # Cast in VMEM (not in the wrapper) so narrow dtypes stay narrow on the wire.
    diff = true_ref[...].astype(jnp.float32) - pred_ref[...].astype(jnp.float32)
    val = jnp.sqrt(diff * diff + jnp.float32(eps2))

    if ragged_rows:
        # Only the final block is ragged; mask work is gated to that one step
        # so the main blocks carry no extra VALU ops.
        last = pl.num_programs(0) - 1

        @pl.when(i == last)
        def _():
            row_ids = jax.lax.broadcasted_iota(jnp.int32, val.shape, 0)
            masked = jnp.where(row_ids < ragged_rows, val, jnp.float32(0.0))
            out_ref[...] += jnp.sum(masked, axis=0, keepdims=True)

        @pl.when(i != last)
        def _():
            out_ref[...] += jnp.sum(val, axis=0, keepdims=True)
    else:
        out_ref[...] += jnp.sum(val, axis=0, keepdims=True)


def charbonnier(y_pred, y_true, epsilon=0.0001):
    """Charbonnier loss: mean(sqrt((y_true - y_pred)**2 + epsilon**2))."""
    assert y_pred.shape == y_true.shape
    n = y_pred.size
    eps2 = float(epsilon) * float(epsilon)

    pred_flat = jnp.ravel(y_pred)
    true_flat = jnp.ravel(y_true)

    rows = n // LANES          # number of complete 128-lane rows
    tail = n - rows * LANES    # <= 127 leftover elements

    if rows == 0:
        # Degenerate tiny input (< 128 elements): plain JAX, kernel not worth it.
        d = true_flat.astype(jnp.float32) - pred_flat.astype(jnp.float32)
        return jnp.sum(jnp.sqrt(d * d + jnp.float32(eps2))) / jnp.float32(n)

    # Lane-dense (rows, 128) slab.  When tail == 0 this is a pure bitcast
    # (no extra HBM pass); otherwise only the aligned prefix goes to the kernel
    # and the tiny tail is handled in the epilogue below.
    pred_2d = pred_flat[: rows * LANES].reshape(rows, LANES)
    true_2d = true_flat[: rows * LANES].reshape(rows, LANES)

    # Dtype-aware block sizing: ~TARGET_BLOCK_BYTES per input per block,
    # rounded to the sublane-packing multiple of the narrowest dtype.
    itemsize_max = max(jnp.dtype(y_pred.dtype).itemsize,
                       jnp.dtype(y_true.dtype).itemsize)
    itemsize_min = min(jnp.dtype(y_pred.dtype).itemsize,
                       jnp.dtype(y_true.dtype).itemsize)
    sub = 32 // itemsize_min                           # 8 f32, 16 bf16, 32 int8
    max_block_rows = TARGET_BLOCK_BYTES // (LANES * itemsize_max)
    max_block_rows = max(sub, (max_block_rows // sub) * sub)

    if rows <= max_block_rows:
        block_rows = rows          # full-extent block (satisfies (8,128) rule)
    else:
        block_rows = max_block_rows

    steps = pl.cdiv(rows, block_rows)
    ragged_rows = rows % block_rows    # 0 unless the last block is partial

    kernel = functools.partial(_charbonnier_kernel,
                               eps2=eps2, ragged_rows=ragged_rows)

    lane_sums = pl.pallas_call(
        kernel,
        out_shape=jax.ShapeDtypeStruct((1, LANES), jnp.float32),
        grid_spec=pltpu.PrefetchScalarGridSpec(
            num_scalar_prefetch=0,
            grid=(steps,),
            in_specs=[
                pl.BlockSpec((block_rows, LANES), lambda i: (i, 0)),
                pl.BlockSpec((block_rows, LANES), lambda i: (i, 0)),
            ],
            out_specs=pl.BlockSpec((1, LANES), lambda i: (0, 0)),
        ),
        compiler_params=pltpu.CompilerParams(
            dimension_semantics=("arbitrary",),
        ),
    )(pred_2d, true_2d)

    # Tiny JAX epilogue: cross-lane reduce, optional <=127-element tail, mean.
    total = jnp.sum(lane_sums)
    if tail:
        tp = pred_flat[rows * LANES:].astype(jnp.float32)
        tt = true_flat[rows * LANES:].astype(jnp.float32)
        d = tt - tp
        total = total + jnp.sum(jnp.sqrt(d * d + jnp.float32(eps2)))
    return total / jnp.float32(n)


if __name__ == "__main__":
    key = jax.random.PRNGKey(0)
    k1, k2, k3, k4 = jax.random.split(key, 4)

    def reference(y_pred, y_true, epsilon=0.0001):
        d = y_true.astype(jnp.float32) - y_pred.astype(jnp.float32)
        return jnp.mean(jnp.sqrt(d * d + jnp.float32(epsilon) ** 2))

    # Required small case, matching the PyTorch module's NCHW usage.
    shape = (2, 4, 16, 16)
    y_pred = jax.random.normal(k1, shape, dtype=jnp.float32)
    y_true = jax.random.normal(k2, shape, dtype=jnp.float32)
    out = jax.block_until_ready(charbonnier(y_pred, y_true, epsilon=0.0001))
    ref = reference(y_pred, y_true, 0.0001)
    assert jnp.allclose(out, ref, rtol=1e-5, atol=1e-6), (out, ref)

    # Larger, unaligned case: exercises multi-block accumulation, the gated
    # ragged-last-block mask (rows % block_rows != 0) and the lane tail.
    n_big = 2 * 4096 * 128 + 777
    yp2 = jax.random.normal(k3, (n_big,), dtype=jnp.float32)
    yt2 = jax.random.normal(k4, (n_big,), dtype=jnp.float32)
    out2 = jax.block_until_ready(charbonnier(yp2, yt2, epsilon=0.0001))
    ref2 = reference(yp2, yt2, 0.0001)
    assert jnp.allclose(out2, ref2, rtol=1e-4, atol=1e-6), (out2, ref2)

    print("KERNEL_OK")
</pallas_src>

<mosaic_0001>
module attributes {stable_mosaic.version = 11 : i64} {
  func.func @_charbonnier_kernel(%arg0: i32, %arg1: memref<16x128xf32, #tpu.memory_space<vmem>>, %arg2: memref<16x128xf32, #tpu.memory_space<vmem>>, %arg3: memref<1x128xf32, #tpu.memory_space<vmem>>) attributes {dimension_semantics = [#tpu.dimension_semantics<arbitrary>], iteration_bounds = array<i64: 1>, scalar_prefetch = 0 : i64, scratch_operands = 0 : i64, tpu.core_type = #tpu.core_type<tc>, window_params = [{transform_indices = @transform_0, window_bounds = array<i64: 16, 128>}, {transform_indices = @transform_1, window_bounds = array<i64: 16, 128>}, {pipeline_mode = #tpu.pipeline_mode<synchronous>, transform_indices = @transform_2, window_bounds = array<i64: 1, 128>}]} {
    %c0_i32 = arith.constant 0 : i32
    %0 = arith.cmpi eq, %arg0, %c0_i32 : i32
    %1 = arith.extui %0 : i1 to i32
    %c0_i32_0 = arith.constant 0 : i32
    %2 = arith.cmpi ne, %1, %c0_i32_0 : i32
    scf.if %2 {
      %cst_9 = arith.constant 0.000000e+00 : f32
      %15 = vector.broadcast %cst_9 : f32 to vector<1x128xf32>
      %c0_10 = arith.constant 0 : index
      %c0_11 = arith.constant 0 : index
      %16 = vector.load %arg3[%c0_10, %c0_11] : memref<1x128xf32, #tpu.memory_space<vmem>>, vector<1x128xf32>
      tpu.vector_store %arg3[%c0_10, %c0_11], %15 {strides = array<i32>} : memref<1x128xf32, #tpu.memory_space<vmem>>, vector<1x128xf32>,
    } else {
    }
    %c0 = arith.constant 0 : index
    %c0_1 = arith.constant 0 : index
    %3 = vector.load %arg2[%c0, %c0_1] : memref<16x128xf32, #tpu.memory_space<vmem>>, vector<16x128xf32>
    %c0_2 = arith.constant 0 : index
    %c0_3 = arith.constant 0 : index
    %4 = vector.load %arg1[%c0_2, %c0_3] : memref<16x128xf32, #tpu.memory_space<vmem>>, vector<16x128xf32>
    %5 = arith.subf %3, %4 : vector<16x128xf32>
    %6 = arith.mulf %5, %5 : vector<16x128xf32>
    %cst = arith.constant 9.99999993E-9 : f32
    %7 = vector.broadcast %cst : f32 to vector<16x128xf32>
    %8 = arith.addf %6, %7 : vector<16x128xf32>
    %9 = math.sqrt %8 : vector<16x128xf32>
    %c0_4 = arith.constant 0 : index
    %c0_5 = arith.constant 0 : index
    %10 = vector.load %arg3[%c0_4, %c0_5] : memref<1x128xf32, #tpu.memory_space<vmem>>, vector<1x128xf32>
    %cst_6 = arith.constant dense<0.000000e+00> : vector<128xf32>
    %11 = vector.multi_reduction <add>, %9, %cst_6 [0] : vector<16x128xf32> to vector<128xf32>
    %12 = vector.shape_cast %11 : vector<128xf32> to vector<1x128xf32>
    %13 = arith.addf %10, %12 : vector<1x128xf32>
    %c0_7 = arith.constant 0 : index
    %c0_8 = arith.constant 0 : index
    %14 = vector.load %arg3[%c0_7, %c0_8] : memref<1x128xf32, #tpu.memory_space<vmem>>, vector<1x128xf32>
    tpu.vector_store %arg3[%c0_7, %c0_8], %13 {strides = array<i32>} : memref<1x128xf32, #tpu.memory_space<vmem>>, vector<1x128xf32>,
    return
  }
  func.func @transform_0(%arg0: i32) -> (i32, i32) {
    %c0_i32 = arith.constant 0 : i32
    %c0_i32_0 = arith.constant 0 : i32
    return %arg0, %c0_i32 : i32, i32
  }
  func.func @transform_1(%arg0: i32) -> (i32, i32) {
    %c0_i32 = arith.constant 0 : i32
    %c0_i32_0 = arith.constant 0 : i32
    return %arg0, %c0_i32 : i32, i32
  }
  func.func @transform_2(%arg0: i32) -> (i32, i32) {
    %c0_i32 = arith.constant 0 : i32
    %c0_i32_0 = arith.constant 0 : i32
    %c0_i32_1 = arith.constant 0 : i32
    return %c0_i32, %c0_i32_0 : i32, i32
  }
}

</mosaic_0001>

<bundles_post_ra>
// kernel: tpu_custom_call.1
= control target key start
LH: loop header
LB: loop body
LE: loop exit
PB: predicated region body
PF: predicated region fallthrough
CT: control target
= control target key end

     0   :  { %7 = vsyncpa [#allocation3], 0  ;;  %s229_s0 = inlined_call_operand.hbm [shape: f32[16,128], index: 0, kind: input, shape index: {}]   ;;  %s230_s1 = inlined_call_operand.hbm [shape: f32[16,128], index: 1, kind: input, shape index: {}]   ;;  %s231_s2 = inlined_call_operand.hbm [shape: f32[1,128], index: 2, kind: output, shape index: {}]  }
   0x1   :  { %8 = vsyncpa [#allocation6], 0 }
   0x2   :  { %9 = vsyncpa [#allocation4], 0  ;;  %s14_s11 = sshll.u32 %s229_s0, 4  ;;  %s199_s12 = smov [#allocation2]   ;;  %s15_s11 = int_to_ptr.hbm [resolvable:$true] %s14_s11 }
   0x3   :  { %s16_s13 = sshll.u32 %s199_s12, 4  ;;  %s27_s16 = sshll.u32 %s230_s1, 4  ;;  %s17_s13 = int_to_ptr.vmem [resolvable:$true] %s16_s13  ;;  %s28_s16 = int_to_ptr.hbm [resolvable:$true] %s27_s16 }
   0x4   :  { %s200_s17 = smov 128   ;;  %s201_s18 = smov 8  }
   0x5   :  { %22 = dma.hbm_to_vmem [thread:$0]  %s15_s11, 256, %s17_s13, [#allocation3], %s200_s17, %s200_s17, %s201_s18  }
   0x6   :  { %s202_s19 = smov [#allocation5]  }
   0x7   :  { %s29_s20 = sshll.u32 %s202_s19, 4  ;;  %s30_s20 = int_to_ptr.vmem [resolvable:$true] %s29_s20 }
   0x8   :  { %35 = dma.hbm_to_vmem [thread:$0]  %s28_s16, 256, %s30_s20, [#allocation6], %s200_s17, %s200_s17, %s201_s18  }
   0x9   :  { %193 = dma.done.wait [#allocation3], 256  }
   0xa   :  { %194 = vsyncadd [#allocation3], 4294967040 }
   0xb   :  { %195 = dma.done.wait [#allocation6], 256  }
   0xc   :  { %196 = vsyncadd [#allocation6], 4294967040  ;;  %v203_v0 = vmov 0.0   ;;  %v49_v1 = vld [vmem:[#allocation5] sm:$0xff]  ;;  %v50_v2 = vld [vmem:[#allocation5 + $0x8] sm:$0xff]  ;;  %s204_s0 = smov [#allocation7]  }
   0xd   :  { %48 = vst [vmem:[#allocation7] sm:$0x1] %v203_v0  ;;  %v51_v3 = vld [vmem:[#allocation2] sm:$0xff]  ;;  %v52_v4 = vld [vmem:[#allocation2 + $0x8] sm:$0xff]  ;;  %s98_s1 = sshll.u32 %s204_s0, 4  ;;  %s100_s23 = sshll.u32 %s231_s2, 4  ;;  %s99_s1 = int_to_ptr.vmem [resolvable:$true] %s98_s1  ;;  %s101_s23 = int_to_ptr.hbm [resolvable:$true] %s100_s23 }
   0xe   :  { %v53_v5 = vsub.f32 %v49_v1, %v51_v3  ;;  %v54_v6 = vsub.f32 %v50_v2, %v52_v4 }
  0x10   :  { %v55_v7 = vmul.f32 %v53_v5, %v53_v5  ;;  %v56_v8 = vmul.f32 %v54_v6, %v54_v6 }
  0x12   :  { %v57_v9 = vadd.f32 1e-08, %v55_v7  ;;  %v58_v10 = vadd.f32 1e-08, %v56_v8 }
  0x14   :  { %117 = vrsqrt.f32 %v57_v9  ;;  %vm66_vm0 = vcmp.eq.f32.partialorder %v57_v9, inf  ;;  %v69_v22 = vand.u32 2147483648, %v57_v9  ;;  %vm68_vm1 = vcmp.eq.f32.partialorder %v57_v9, 0.0  ;;  %v83_v37 = vld [vmem:[#allocation7] sm:$0x1] }
  0x15   :  { %119 = vrsqrt.f32 %v58_v10  ;;  %vm78_vm2 = vcmp.eq.f32.partialorder %v58_v10, inf  ;;  %v81_v25 = vand.u32 2147483648, %v58_v10  ;;  %vm80_vm3 = vcmp.eq.f32.partialorder %v58_v10, 0.0 }
  0x1a   :  { %v118_v11 = vpop.eup %117 }
  0x1b   :  { %v120_v12 = vpop.eup %119  ;;  %v60_v13 = vmul.f32 %v118_v11, %v57_v9 }
  0x1c   :  { %v72_v14 = vmul.f32 %v120_v12, %v58_v10 }
  0x1d   :  { %v61_v15 = vmul.f32 %v118_v11, %v60_v13 }
  0x1e   :  { %v73_v16 = vmul.f32 %v120_v12, %v72_v14 }
  0x1f   :  { %v62_v17 = vmul.f32 0.5, %v61_v15 }
  0x20   :  { %v74_v18 = vmul.f32 0.5, %v73_v16 }
  0x21   :  { %v63_v19 = vsub.f32 1.5, %v62_v17 }
  0x22   :  { %v75_v20 = vsub.f32 1.5, %v74_v18 }
  0x23   :  { %v64_v21 = vmul.f32 %v118_v11, %v63_v19 }
  0x24   :  { %v76_v23 = vmul.f32 %v120_v12, %v75_v20 }
  0x25   :  { %v65_v24 = vmul.f32 %v64_v21, %v57_v9 }
  0x26   :  { %v77_v26 = vmul.f32 %v76_v23, %v58_v10 }
  0x27   :  { %v67_v27 = vsel %vm66_vm0, %v57_v9, %v65_v24 }
  0x28   :  { %v70_v28 = vsel %vm68_vm1, %v69_v22, %v67_v27  ;;  %v79_v29 = vsel %vm78_vm2, %v58_v10, %v77_v26 }
  0x29   :  { %v82_v30 = vsel %vm80_vm3, %v81_v25, %v79_v29 }
  0x2a   :  { %v84_v31 = vadd.f32 %v82_v30, %v70_v28 }
  0x2c   :  { %v85_v32 = vrot.slane %v84_v31, 4 }
  0x2e   :  { %v86_v33 = vadd.f32 %v85_v32, %v84_v31 }
  0x30   :  { %v87_v34 = vrot.slane %v86_v33, 2 }
  0x32   :  { %v88_v35 = vadd.f32 %v87_v34, %v86_v33 }
  0x34   :  { %v89_v36 = vrot.slane %v88_v35, 1 }
  0x36   :  { %v90_v38 = vadd.f32 %v89_v36, %v88_v35 }
  0x38   :  { %v91_v39 = vadd.f32 %v90_v38, %v83_v37 }
  0x3a   :  { %92 = vst [vmem:[#allocation7] sm:$0x1] %v91_v39 }
  0x3b   :  { %103 = dma.vmem_to_hbm [thread:$0]  %s99_s1, 16, %s101_s23, [#allocation4]  }
  0x3c   :  { %197 = dma.done.wait [#allocation4], 16  }
  0x3d   :  { %198 = vsyncadd [#allocation4], 4294967280 }
  0x3e   :  { %108 = vsyncpa [#allocation3], 1 }
  0x3f   :  { %109 = vsyncpa [#allocation6], 1 }
  0x40   :  { %110 = vsyncpa [#allocation4], 1 }

</bundles_post_ra>
